<compile_context>
chip_gen: v7x
topology: tpu7x:2x2x1
jax: 0.10.0
libtpu: 0.0.40
codegen_flags: <defaults>
</compile_context>

<pallas_src>
import functools

import jax
import jax.numpy as jnp
from jax.experimental import pallas as pl
from jax.experimental.pallas import tpu as pltpu

LANE = 128
SUBLANE = 8


def _round_up(x, m):
    return (x + m - 1) // m * m


def _mlp_kernel(x_ref, w1_ref, b1_ref, w2_ref, b2_ref, o_ref):
    # fc1 + ReLU (MXU matmul, f32 accumulate; bias broadcast-add)
    h = jnp.dot(x_ref[...], w1_ref[...], preferred_element_type=jnp.float32)
    h = jnp.maximum(h + b1_ref[...], 0.0)
    # fc2 + ReLU
    o = jnp.dot(h, w2_ref[...], preferred_element_type=jnp.float32)
    o_ref[...] = jnp.maximum(o + b2_ref[...], 0.0).astype(o_ref.dtype)


def pad_params(w1, b1, w2, b2):
    """Pad params to lane width once (hoisted out of the per-call path).
    Weights are stored (in, out) so the kernel computes x @ W (== x @ W_torch.T)."""
    in1, out1 = w1.shape            # 400, 120
    out2 = w2.shape[1]              # 84
    out1_p = _round_up(out1, LANE)  # 128
    out2_p = _round_up(out2, LANE)  # 128
    w1_p = jnp.zeros((in1, out1_p), jnp.float32).at[:, :out1].set(
        w1.astype(jnp.float32))
    b1_p = jnp.zeros((1, out1_p), jnp.float32).at[:, :out1].set(
        b1.astype(jnp.float32))
    w2_p = jnp.zeros((out1_p, out2_p), jnp.float32).at[:out1, :out2].set(
        w2.astype(jnp.float32))
    b2_p = jnp.zeros((1, out2_p), jnp.float32).at[:, :out2].set(
        b2.astype(jnp.float32))
    return w1_p, b1_p, w2_p, b2_p


@functools.partial(jax.jit,
                   static_argnames=("tile_b", "out_features", "keep_padded"))
def server_model_cifar_forward(x_nchw, w1_p, b1_p, w2_p, b2_p, *,
                               tile_b=4096, out_features=84,
                               keep_padded=False):
    """x_nchw: (B, 16, 5, 5). Padded params from pad_params().
    Returns (B, 84) float32 (or the lane-dense (B, 128) if keep_padded)."""
    B = x_nchw.shape[0]
    x_flat = x_nchw.reshape(B, -1)          # matches torch.flatten(x, 1)
    in1 = x_flat.shape[1]                   # 400
    out1_p = w1_p.shape[1]                  # 128
    out2_p = w2_p.shape[1]                  # 128
    assert w1_p.shape[0] == in1 and w2_p.shape[0] == out1_p

    # --- batch tile selection -------------------------------------------
    # Cap the tile so the double-buffered streaming footprint (x in + out)
    # plus resident weights stays within a conservative VMEM budget.
    row_stream_bytes = 2 * (in1 + out2_p) * 4          # double-buffered, f32
    weight_bytes = 2 * (in1 * out1_p + out1_p * out2_p + out1_p + out2_p) * 4
    vmem_budget = 40 * 1024 * 1024
    tb_cap = max(SUBLANE, (vmem_budget - weight_bytes) // row_stream_bytes)

    tb = min(tile_b, tb_cap, _round_up(B, SUBLANE))
    # Keep >= 2 grid steps when the batch can be split so the "parallel"
    # axis has work for both v7x TensorCores (no-op on v5e/v6e).
    if B > SUBLANE and pl.cdiv(B, tb) < 2:
        tb = pl.cdiv(B, 2)
    tb = max(SUBLANE, _round_up(tb, SUBLANE))

    grid = (pl.cdiv(B, tb),)   # ragged last block: no wrapper-side jnp.pad

    # --- scoped VMEM: actual footprint + ~25% headroom, capped at 48 MiB ---
    footprint = tb * row_stream_bytes + weight_bytes
    vmem_limit = int(footprint * 1.25) + (2 << 20)
    vmem_limit = min(max(vmem_limit, 8 << 20), 48 << 20)

    cost = pl.CostEstimate(
        flops=2 * B * (in1 * out1_p + out1_p * out2_p),
        transcendentals=0,
        bytes_accessed=(B * in1 * 4                       # x stream
                        + (in1 * out1_p + out1_p * out2_p
                           + out1_p + out2_p) * 4          # weights/biases
                        + B * out2_p * 4))                 # output

    out_p = pl.pallas_call(
        _mlp_kernel,
        out_shape=jax.ShapeDtypeStruct((B, out2_p), jnp.float32),
        grid=grid,
        in_specs=[
            pl.BlockSpec((tb, in1), lambda i: (i, 0)),       # x tile streams
            pl.BlockSpec((in1, out1_p), lambda i: (0, 0)),   # weights resident
            pl.BlockSpec((1, out1_p), lambda i: (0, 0)),
            pl.BlockSpec((out1_p, out2_p), lambda i: (0, 0)),
            pl.BlockSpec((1, out2_p), lambda i: (0, 0)),
        ],
        out_specs=pl.BlockSpec((tb, out2_p), lambda i: (i, 0)),
        compiler_params=pltpu.CompilerParams(
            dimension_semantics=("parallel",),   # megacore-shard batch tiles
            vmem_limit_bytes=vmem_limit),
        cost_estimate=cost,
    )(x_flat, w1_p, b1_p, w2_p, b2_p)

    if keep_padded:
        # Lane-dense (B, 128) output; cols 84:128 are exactly zero.
        return out_p
    return out_p[:, :out_features]


def init_params(key):
    """nn.Linear default init: U(-1/sqrt(fan_in), +1/sqrt(fan_in))."""
    k1, k2, k3, k4 = jax.random.split(key, 4)
    fan1 = 16 * 5 * 5   # 400
    fan2 = 120
    bound1 = 1.0 / jnp.sqrt(fan1)
    bound2 = 1.0 / jnp.sqrt(fan2)
    w1 = jax.random.uniform(k1, (fan1, 120), jnp.float32, -bound1, bound1)
    b1 = jax.random.uniform(k2, (120,), jnp.float32, -bound1, bound1)
    w2 = jax.random.uniform(k3, (fan2, 84), jnp.float32, -bound2, bound2)
    b2 = jax.random.uniform(k4, (84,), jnp.float32, -bound2, bound2)
    return w1, b1, w2, b2


def _reference(x, w1, b1, w2, b2):
    h = jnp.maximum(x.reshape(x.shape[0], -1) @ w1 + b1, 0.0)
    return jnp.maximum(h @ w2 + b2, 0.0)


if __name__ == "__main__":
    key = jax.random.PRNGKey(0)
    kx, kx2, kp = jax.random.split(key, 3)
    w1, b1, w2, b2 = init_params(kp)
    padded = jax.block_until_ready(pad_params(w1, b1, w2, b2))  # hoisted, once

    # Small demo shape (B=2), NCHW like PyTorch. Single ragged block.
    B = 2
    x = jax.random.normal(kx, (B, 16, 5, 5), jnp.float32)
    out = jax.block_until_ready(server_model_cifar_forward(x, *padded))
    ref = _reference(x, w1, b1, w2, b2)
    assert out.shape == (B, 84)
    assert jnp.allclose(out, ref, atol=1e-5, rtol=1e-5)

    # Exercise the multi-step grid + ragged last block path (B=50, tile 16).
    B2 = 50
    x2 = jax.random.normal(kx2, (B2, 16, 5, 5), jnp.float32)
    out2 = jax.block_until_ready(
        server_model_cifar_forward(x2, *padded, tile_b=16))
    ref2 = _reference(x2, w1, b1, w2, b2)
    assert out2.shape == (B2, 84)
    assert jnp.allclose(out2, ref2, atol=1e-5, rtol=1e-5)

    # Lane-dense padded-output path: padded cols must be exactly zero.
    out3 = jax.block_until_ready(
        server_model_cifar_forward(x2, *padded, keep_padded=True))
    assert out3.shape == (B2, 128)
    assert jnp.allclose(out3[:, :84], ref2, atol=1e-5, rtol=1e-5)
    assert jnp.all(out3[:, 84:] == 0.0)

    print("KERNEL_OK")
</pallas_src>

<mosaic_0001>
module attributes {stable_mosaic.version = 11 : i64} {
  func.func @_mlp_kernel(%arg0: i32, %arg1: memref<8x400xf32, #tpu.memory_space<vmem>>, %arg2: memref<400x128xf32, #tpu.memory_space<vmem>>, %arg3: memref<1x128xf32, #tpu.memory_space<vmem>>, %arg4: memref<128x128xf32, #tpu.memory_space<vmem>>, %arg5: memref<1x128xf32, #tpu.memory_space<vmem>>, %arg6: memref<8x128xf32, #tpu.memory_space<vmem>>) attributes {dimension_semantics = [#tpu.dimension_semantics<parallel>], iteration_bounds = array<i64: 1>, scalar_prefetch = 0 : i64, scratch_operands = 0 : i64, tpu.core_type = #tpu.core_type<tc>, window_params = [{transform_indices = @transform_0, window_bounds = array<i64: 8, 400>}, {pipeline_mode = #tpu.pipeline_mode<synchronous>, transform_indices = @transform_1, window_bounds = array<i64: 400, 128>}, {pipeline_mode = #tpu.pipeline_mode<synchronous>, transform_indices = @transform_2, window_bounds = array<i64: 1, 128>}, {pipeline_mode = #tpu.pipeline_mode<synchronous>, transform_indices = @transform_3, window_bounds = array<i64: 128, 128>}, {pipeline_mode = #tpu.pipeline_mode<synchronous>, transform_indices = @transform_4, window_bounds = array<i64: 1, 128>}, {transform_indices = @transform_5, window_bounds = array<i64: 8, 128>}]} {
    %c0 = arith.constant 0 : index
    %c0_0 = arith.constant 0 : index
    %0 = vector.load %arg1[%c0, %c0_0] : memref<8x400xf32, #tpu.memory_space<vmem>>, vector<8x400xf32>
    %c0_1 = arith.constant 0 : index
    %c0_2 = arith.constant 0 : index
    %1 = vector.load %arg2[%c0_1, %c0_2] : memref<400x128xf32, #tpu.memory_space<vmem>>, vector<400x128xf32>
    %cst = arith.constant dense<0.000000e+00> : vector<8x128xf32>
    %2 = tpu.matmul %0, %1, %cst {dimension_numbers = #tpu.dot_dimension_numbers<[1], [0], [0], [1], [0, 0, 1, 1], [], []>} : vector<8x400xf32>, vector<400x128xf32>, vector<8x128xf32> -> vector<8x128xf32>
    %c0_3 = arith.constant 0 : index
    %c0_4 = arith.constant 0 : index
    %3 = vector.load %arg3[%c0_3, %c0_4] : memref<1x128xf32, #tpu.memory_space<vmem>>, vector<1x128xf32>
    %4 = vector.broadcast %3 : vector<1x128xf32> to vector<8x128xf32>
    %5 = arith.addf %2, %4 : vector<8x128xf32>
    %cst_5 = arith.constant 0.000000e+00 : f32
    %6 = vector.broadcast %cst_5 : f32 to vector<8x128xf32>
    %7 = arith.maximumf %5, %6 : vector<8x128xf32>
    %c0_6 = arith.constant 0 : index
    %c0_7 = arith.constant 0 : index
    %8 = vector.load %arg4[%c0_6, %c0_7] : memref<128x128xf32, #tpu.memory_space<vmem>>, vector<128x128xf32>
    %cst_8 = arith.constant dense<0.000000e+00> : vector<8x128xf32>
    %9 = tpu.matmul %7, %8, %cst_8 {dimension_numbers = #tpu.dot_dimension_numbers<[1], [0], [0], [1], [0, 0, 1, 1], [], []>} : vector<8x128xf32>, vector<128x128xf32>, vector<8x128xf32> -> vector<8x128xf32>
    %c0_9 = arith.constant 0 : index
    %c0_10 = arith.constant 0 : index
    %10 = vector.load %arg5[%c0_9, %c0_10] : memref<1x128xf32, #tpu.memory_space<vmem>>, vector<1x128xf32>
    %11 = vector.broadcast %10 : vector<1x128xf32> to vector<8x128xf32>
    %12 = arith.addf %9, %11 : vector<8x128xf32>
    %cst_11 = arith.constant 0.000000e+00 : f32
    %13 = vector.broadcast %cst_11 : f32 to vector<8x128xf32>
    %14 = arith.maximumf %12, %13 : vector<8x128xf32>
    %c0_12 = arith.constant 0 : index
    %c0_13 = arith.constant 0 : index
    %15 = vector.load %arg6[%c0_12, %c0_13] : memref<8x128xf32, #tpu.memory_space<vmem>>, vector<8x128xf32>
    tpu.vector_store %arg6[%c0_12, %c0_13], %14 {strides = array<i32>} : memref<8x128xf32, #tpu.memory_space<vmem>>, vector<8x128xf32>,
    return
  }
  func.func @transform_0(%arg0: i32) -> (i32, i32) {
    %c0_i32 = arith.constant 0 : i32
    %c0_i32_0 = arith.constant 0 : i32
    return %arg0, %c0_i32 : i32, i32
  }
  func.func @transform_1(%arg0: i32) -> (i32, i32) {
    %c0_i32 = arith.constant 0 : i32
    %c0_i32_0 = arith.constant 0 : i32
    %c0_i32_1 = arith.constant 0 : i32
    return %c0_i32, %c0_i32_0 : i32, i32
  }
  func.func @transform_2(%arg0: i32) -> (i32, i32) {
    %c0_i32 = arith.constant 0 : i32
    %c0_i32_0 = arith.constant 0 : i32
    %c0_i32_1 = arith.constant 0 : i32
    return %c0_i32, %c0_i32_0 : i32, i32
  }
  func.func @transform_3(%arg0: i32) -> (i32, i32) {
    %c0_i32 = arith.constant 0 : i32
    %c0_i32_0 = arith.constant 0 : i32
    %c0_i32_1 = arith.constant 0 : i32
    return %c0_i32, %c0_i32_0 : i32, i32
  }
  func.func @transform_4(%arg0: i32) -> (i32, i32) {
    %c0_i32 = arith.constant 0 : i32
    %c0_i32_0 = arith.constant 0 : i32
    %c0_i32_1 = arith.constant 0 : i32
    return %c0_i32, %c0_i32_0 : i32, i32
  }
  func.func @transform_5(%arg0: i32) -> (i32, i32) {
    %c0_i32 = arith.constant 0 : i32
    %c0_i32_0 = arith.constant 0 : i32
    return %arg0, %c0_i32 : i32, i32
  }
}

</mosaic_0001>

<bundles_post_ra>
// kernel: server_model_cifar_forward.1
= control target key start
LH: loop header
LB: loop body
LE: loop exit
PB: predicated region body
PF: predicated region fallthrough
CT: control target
= control target key end

     0   :  { %10 = vsyncpa [#allocation3], 0  ;;  %v590_v3 = vmov 0.0|0.0   ;;  %v591_v28 = vmov 1983009808   ;;  %v93_v30 = vlaneseq  ;;  %vm125_vm0 = vcmask 130048   ;;  %s872_s0 = inlined_call_operand.vmem [shape: f32[2,400], index: 0, kind: input, shape index: {}]   ;;  %s873_s1 = inlined_call_operand.vmem [shape: f32[400,128], index: 1, kind: input, shape index: {}]   ;;  %s874_s2 = inlined_call_operand.vmem [shape: f32[1,128], index: 2, kind: input, shape index: {}]   ;;  %s875_s3 = inlined_call_operand.vmem [shape: f32[128,128], index: 3, kind: input, shape index: {}]   ;;  %s876_s4 = inlined_call_operand.vmem [shape: f32[1,128], index: 4, kind: input, shape index: {}]   ;;  %s877_s5 = inlined_call_operand.hbm [shape: f32[2,128], index: 5, kind: output, shape index: {}]  }
   0x1   :  { %v41_v0 = vld [vmem:[%s873_s1 + $0x80] sm:$0xff]  ;;  %v42_v1 = vld [vmem:[%s873_s1 + $0x88] sm:$0xff]  ;;  %502 = vmatprep.subr.bf16.mxu1 %v590_v3  ;;  %v43_v9 = vld [vmem:[%s873_s1 + $0x90] sm:$0xff]  ;;  %v91_v29 = vunpack.c.l.s4 %v591_v28  ;;  %vm592_vm1 = vmmov 0  }
   0x2   :  { %v470_v2 = vpack.c.bf16 %v42_v1, %v41_v0  ;;  %v25_v4 = vld [vmem:[%s873_s1] sm:$0xff]  ;;  %v26_v5 = vld [vmem:[%s873_s1 + $0x8] sm:$0xff]  ;;  %v44_v10 = vld [vmem:[%s873_s1 + $0x98] sm:$0xff]  ;;  %v94_v41 = vshrl.u32 %v93_v30, 7 }
   0x3   :  { %v57_v6 = vld [vmem:[%s873_s1 + $0x100] sm:$0xff]  ;;  %v472_v7 = vpack.c.bf16 %v26_v5, %v25_v4  ;;  %v58_v8 = vld [vmem:[%s873_s1 + $0x108] sm:$0xff]  ;;  %v474_v12 = vpack.c.bf16 %v44_v10, %v43_v9  ;;  %v27_v13 = vld [vmem:[%s873_s1 + $0x10] sm:$0xff]  ;;  %v92_v40 = vunpack.c.0.s8 %v91_v29 }
   0x4   :  { %471 = vmatprep.subr.bf16.mxu0 %v470_v2  ;;  %v503_v11 = vpack.c.bf16 %v58_v8, %v57_v6  ;;  %v28_v14 = vld [vmem:[%s873_s1 + $0x18] sm:$0xff]  ;;  %v59_v15 = vld [vmem:[%s873_s1 + $0x110] sm:$0xff]  ;;  %v45_v18 = vld [vmem:[%s873_s1 + $0xa0] sm:$0xff] }
   0x5   :  { %473 = vmatpush3.bf16.msra.mxu0 %v472_v7  ;;  %v476_v16 = vpack.c.bf16 %v28_v14, %v27_v13  ;;  %v60_v17 = vld [vmem:[%s873_s1 + $0x118] sm:$0xff]  ;;  %v46_v19 = vld [vmem:[%s873_s1 + $0xa8] sm:$0xff]  ;;  %v29_v22 = vld [vmem:[%s873_s1 + $0x20] sm:$0xff]  ;;  %v95_v54 = vsub.s32 %v92_v40, %v94_v41 }
   0x6   :  { %504 = vmatpush1.bf16.msra.mxu1 %v503_v11  ;;  %475 = vmatprep.subr.bf16.mxu0 %v474_v12  ;;  %v506_v20 = vpack.c.bf16 %v60_v17, %v59_v15  ;;  %v478_v21 = vpack.c.bf16 %v46_v19, %v45_v18  ;;  %v30_v23 = vld [vmem:[%s873_s1 + $0x28] sm:$0xff]  ;;  %v61_v24 = vld [vmem:[%s873_s1 + $0x120] sm:$0xff]  ;;  %v47_v26 = vld [vmem:[%s873_s1 + $0xb0] sm:$0xff] }
   0x7   :  { %505 = vmatprep.subr.bf16.mxu1 %v590_v3  ;;  %v62_v25 = vld [vmem:[%s873_s1 + $0x128] sm:$0xff]  ;;  %v48_v27 = vld [vmem:[%s873_s1 + $0xb8] sm:$0xff]  ;;  %v480_v31 = vpack.c.bf16 %v30_v23, %v29_v22  ;;  %v31_v34 = vld [vmem:[%s873_s1 + $0x30] sm:$0xff] }
   0x8   :  { %v509_v32 = vpack.c.bf16 %v62_v25, %v61_v24  ;;  %v482_v33 = vpack.c.bf16 %v48_v27, %v47_v26  ;;  %v32_v35 = vld [vmem:[%s873_s1 + $0x38] sm:$0xff]  ;;  %v63_v36 = vld [vmem:[%s873_s1 + $0x130] sm:$0xff]  ;;  %v49_v38 = vld [vmem:[%s873_s1 + $0xc0] sm:$0xff] }
   0x9   :  { %477 = vmatpush3.bf16.msra.mxu0 %v476_v16  ;;  %v64_v37 = vld [vmem:[%s873_s1 + $0x138] sm:$0xff]  ;;  %v50_v39 = vld [vmem:[%s873_s1 + $0xc8] sm:$0xff]  ;;  %v484_v42 = vpack.c.bf16 %v32_v35, %v31_v34  ;;  %v33_v45 = vld [vmem:[%s873_s1 + $0x40] sm:$0xff] }
   0xa   :  { %507 = vmatpush1.bf16.msra.mxu1 %v506_v20  ;;  %479 = vmatprep.subr.bf16.mxu0 %v478_v21  ;;  %v512_v43 = vpack.c.bf16 %v64_v37, %v63_v36  ;;  %v486_v44 = vpack.c.bf16 %v50_v39, %v49_v38  ;;  %v34_v46 = vld [vmem:[%s873_s1 + $0x48] sm:$0xff]  ;;  %v65_v47 = vld [vmem:[%s873_s1 + $0x140] sm:$0xff]  ;;  %v51_v49 = vld [vmem:[%s873_s1 + $0xd0] sm:$0xff] }
   0xb   :  { %508 = vmatprep.subr.bf16.mxu1 %v590_v3  ;;  %v66_v48 = vld [vmem:[%s873_s1 + $0x148] sm:$0xff]  ;;  %v52_v50 = vld [vmem:[%s873_s1 + $0xd8] sm:$0xff]  ;;  %v35_v51 = vld [vmem:[%s873_s1 + $0x50] sm:$0xff]  ;;  %v488_v55 = vpack.c.bf16 %v34_v46, %v33_v45 }
   0xc   :  { %v36_v52 = vld [vmem:[%s873_s1 + $0x58] sm:$0xff]  ;;  %v67_v53 = vld [vmem:[%s873_s1 + $0x150] sm:$0xff]  ;;  %v515_v57 = vpack.c.bf16 %v66_v48, %v65_v47  ;;  %v490_v58 = vpack.c.bf16 %v52_v50, %v51_v49  ;;  %v560_v59 = vld [vmem:[%s872_s0] ss:$8 sps:$4 sm:$0xff]  }
   0xd   :  { %481 = vmatpush3.bf16.msra.mxu0 %v480_v31  ;;  %v68_v56 = vld [vmem:[%s873_s1 + $0x158] sm:$0xff]  ;;  %v53_v60 = vld [vmem:[%s873_s1 + $0xe0] sm:$0xff]  ;;  %v54_v61 = vld [vmem:[%s873_s1 + $0xe8] sm:$0xff]  ;;  %v96_v63 = vrot.slane %v560_v59, %v95_v54  ;;  %v492_v2 = vpack.c.bf16 %v36_v52, %v35_v51 }
   0xe   :  { %510 = vmatpush1.bf16.msra.mxu1 %v509_v32  ;;  %483 = vmatprep.subr.bf16.mxu0 %v482_v33  ;;  %v562_v62 = vld [vmem:[%s872_s0 + $0x10] ss:$8 sps:$4 sm:$0xff]   ;;  %v564_v0 = vld [vmem:[%s872_s0 + $0x4] ss:$8 sps:$4 sm:$0xff]   ;;  %v565_v1 = vld [vmem:[%s872_s0 + $0x14] ss:$8 sps:$4 sm:$0xff]   ;;  %v518_v4 = vpack.c.bf16 %v68_v56, %v67_v53  ;;  %v494_v6 = vpack.c.bf16 %v54_v61, %v53_v60 }
   0xf   :  { %511 = vmatprep.subr.bf16.mxu1 %v590_v3  ;;  %v110_v5 = vrot.slane %v562_v62, %v95_v54  ;;  %v37_v7 = vld [vmem:[%s873_s1 + $0x60] sm:$0xff]  ;;  %v38_v8 = vld [vmem:[%s873_s1 + $0x68] sm:$0xff]  ;;  %v103_v10 = vrot.slane %v564_v0, %v95_v54  ;;  %v117_v11 = vrot.slane %v565_v1, %v95_v54  ;;  %v55_v13 = vld [vmem:[%s873_s1 + $0xf0] sm:$0xff] }
  0x10   :  { %v69_v9 = vld [vmem:[%s873_s1 + $0x160] sm:$0xff]  ;;  %v70_v12 = vld [vmem:[%s873_s1 + $0x168] sm:$0xff]  ;;  %v56_v14 = vld [vmem:[%s873_s1 + $0xf8] sm:$0xff]  ;;  %v496_v17 = vpack.c.bf16 %v38_v8, %v37_v7 }
  0x11   :  { %485 = vmatpush3.bf16.msra.mxu0 %v484_v42  ;;  %v119_v15 = vcombine.high %v96_v63, %v110_v5  ;;  %v121_v16 = vcombine.high %v103_v10, %v117_v11  ;;  %v521_v18 = vpack.c.bf16 %v70_v12, %v69_v9  ;;  %v498_v19 = vpack.c.bf16 %v56_v14, %v55_v13  ;;  %v39_v20 = vld [vmem:[%s873_s1 + $0x70] sm:$0xff]  ;;  %v40_v21 = vld [vmem:[%s873_s1 + $0x78] sm:$0xff]  ;;  %v269_v26 = vld [vmem:[%s875_s3] sm:$0xff] }
  0x12   :  { %513 = vmatpush1.bf16.msra.mxu1 %v512_v43  ;;  %487 = vmatprep.subr.bf16.mxu0 %v486_v44  ;;  %v71_v22 = vld [vmem:[%s873_s1 + $0x170] sm:$0xff]  ;;  %v72_v23 = vld [vmem:[%s873_s1 + $0x178] sm:$0xff]  ;;  %v500_v24 = vpack.c.bf16 %v40_v21, %v39_v20  ;;  %v270_v27 = vld [vmem:[%s875_s3 + $0x8] sm:$0xff]  ;;  %v118_v30 = vcombine.low %v96_v63, %v110_v5  ;;  %v120_v35 = vcombine.low %v103_v10, %v117_v11 }
  0x13   :  { %514 = vmatprep.subr.bf16.mxu1 %v590_v3  ;;  %192 = vmatprep.mubr.f32.mxu0 %v119_v15  ;;  %v524_v25 = vpack.c.bf16 %v72_v23, %v71_v22  ;;  %v73_v28 = vld [vmem:[%s873_s1 + $0x180] sm:$0xff]  ;;  %v74_v29 = vld [vmem:[%s873_s1 + $0x188] sm:$0xff]  ;;  %v530_v31 = vpack.c.bf16 %v270_v27, %v269_v26  ;;  %v271_v33 = vld [vmem:[%s875_s3 + $0x10] sm:$0xff] }
  0x14   :  { %381 = vmatprep.mubr.msk.f32.mxu1 %vm125_vm0, %v121_v16  ;;  %v527_v32 = vpack.c.bf16 %v74_v29, %v73_v28  ;;  %v272_v34 = vld [vmem:[%s875_s3 + $0x18] sm:$0xff]  ;;  %v273_v37 = vld [vmem:[%s875_s3 + $0x20] sm:$0xff]  ;;  %v274_v38 = vld [vmem:[%s875_s3 + $0x28] sm:$0xff] }
  0x15   :  { %489 = vmatpush3.bf16.msra.mxu0 %v488_v55  ;;  %v533_v36 = vpack.c.bf16 %v272_v34, %v271_v33  ;;  %v536_v39 = vpack.c.bf16 %v274_v38, %v273_v37  ;;  %v275_v40 = vld [vmem:[%s875_s3 + $0x30] sm:$0xff]  ;;  %v276_v41 = vld [vmem:[%s875_s3 + $0x38] sm:$0xff]  ;;  %v277_v43 = vld [vmem:[%s875_s3 + $0x40] sm:$0xff]  ;;  %v593_v55 = vmov 0.0  }
  0x16   :  { %516 = vmatpush1.bf16.msra.mxu1 %v515_v57  ;;  %491 = vmatprep.subr.bf16.mxu0 %v490_v58  ;;  %v539_v42 = vpack.c.bf16 %v276_v41, %v275_v40  ;;  %v278_v44 = vld [vmem:[%s875_s3 + $0x48] sm:$0xff]  ;;  %v279_v46 = vld [vmem:[%s875_s3 + $0x50] sm:$0xff]  ;;  %v280_v47 = vld [vmem:[%s875_s3 + $0x58] sm:$0xff] }
  0x17   :  { %517 = vmatprep.subr.bf16.mxu1 %v590_v3  ;;  %v542_v45 = vpack.c.bf16 %v278_v44, %v277_v43  ;;  %v545_v48 = vpack.c.bf16 %v280_v47, %v279_v46  ;;  %v281_v49 = vld [vmem:[%s875_s3 + $0x60] sm:$0xff]  ;;  %v282_v50 = vld [vmem:[%s875_s3 + $0x68] sm:$0xff]  ;;  %v283_v52 = vld [vmem:[%s875_s3 + $0x70] sm:$0xff] }
  0x18   :  { %v548_v51 = vpack.c.bf16 %v282_v50, %v281_v49  ;;  %v284_v53 = vld [vmem:[%s875_s3 + $0x78] sm:$0xff]  ;;  %v380_v58 = vld [vmem:[%s874_s2] ss:$0 sm:$0xff] }
  0x19   :  { %493 = vmatpush3.bf16.msra.mxu0 %v492_v2  ;;  %v551_v54 = vpack.c.bf16 %v284_v53, %v283_v52  ;;  %v382_v0 = vld [vmem:[%s876_s4] ss:$0 sm:$0xff] }
  0x1a   :  { %519 = vmatpush1.bf16.msra.mxu1 %v518_v4  ;;  %495 = vmatprep.subr.bf16.mxu0 %v494_v6 }
  0x1b   :  { %520 = vmatprep.subr.bf16.mxu1 %v590_v3 }
  0x1d   :  { %497 = vmatpush3.bf16.msra.mxu0 %v496_v17 }
  0x1e   :  { %522 = vmatpush1.bf16.msra.mxu1 %v521_v18  ;;  %499 = vmatprep.subr.bf16.mxu0 %v498_v19 }
  0x1f   :  { %523 = vmatprep.subr.bf16.mxu1 %v590_v3 }
  0x21   :  { %501 = vmatpush3.bf16.msra.mxu0 %v500_v24 }
  0x22   :  { %525 = vmatpush1.bf16.msra.mxu1 %v524_v25  ;;  %529 = vmatprep.subr.bf16.mxu0 %v590_v3 }
  0x23   :  { %526 = vmatprep.subr.bf16.mxu1 %v590_v3 }
  0x24   :  { %193 = vmatmul.mubr.f32.vlgmr.msra.gmra.mrb[0].mxu0 %v118_v30 }
  0x25   :  { %531 = vmatpush3.bf16.msra.mxu0 %v530_v31  ;;  %467 = vmatprep.mubr.msk.f32.mxu0 %vm592_vm1, %v593_v55 }
  0x26   :  { %528 = vmatpush1.bf16.msra.mxu1 %v527_v32  ;;  %532 = vmatprep.subr.bf16.mxu0 %v590_v3 }
  0x29   :  { %263 = vmatmul.mubr.f32.vlgmr.msra.gmra.mrb[0].mxu1 %v120_v35  ;;  %534 = vmatpush3.bf16.msra.mxu0 %v533_v36 }
  0x2a   :  { %535 = vmatprep.subr.bf16.mxu0 %v590_v3 }
  0x2d   :  { %537 = vmatpush3.bf16.msra.mxu0 %v536_v39 }
  0x2e   :  { %538 = vmatprep.subr.bf16.mxu0 %v590_v3 }
  0x31   :  { %540 = vmatpush3.bf16.msra.mxu0 %v539_v42 }
  0x32   :  { %541 = vmatprep.subr.bf16.mxu0 %v590_v3 }
  0x35   :  { %543 = vmatpush3.bf16.msra.mxu0 %v542_v45 }
  0x36   :  { %544 = vmatprep.subr.bf16.mxu0 %v590_v3 }
  0x39   :  { %546 = vmatpush3.bf16.msra.mxu0 %v545_v48 }
  0x3a   :  { %547 = vmatprep.subr.bf16.mxu0 %v590_v3 }
  0x3d   :  { %549 = vmatpush3.bf16.msra.mxu0 %v548_v51 }
  0x3e   :  { %550 = vmatprep.subr.bf16.mxu0 %v590_v3 }
  0x41   :  { %552 = vmatpush3.bf16.msra.mxu0 %v551_v54 }
  0xf7   :  { %v415_v56 = vpop.f32.mrb[0].mxu0 }
  0xf8   :  { %v416_v57 = vpop.f32.mrb[1].mxu0 }
  0xf9   :  { %v417_v3 = vadd.f32 %v416_v57, %v415_v56 }
  0xfb   :  { %v195_v59 = vadd.f32 %v417_v3, %v380_v58 }
  0xfc   :  { %v264_v60 = vpop.f32.mrb[0].mxu1 }
  0xfd   :  { %v265_v61 = vadd.f32 %v264_v60, %v195_v59  ;;  %v266_v62 = vpop.f32.mrb[1].mxu1 }
  0xff   :  { %v268_v63 = vmax.f32 %v265_v61, 0.0 }
 0x101   :  { %468 = vmatmul.mubr.f32.vlgmr.msra.gmra.mrb[2].mxu0 %v268_v63 }
 0x1d4   :  { %v358_v1 = vpop.f32.mrb[2].mxu0 }
 0x1d5   :  { %v359_v2 = vadd.f32 %v382_v0, %v358_v1  ;;  %v469_v4 = vpop.f32.mrb[3].mxu0 }
 0x1d7   :  { %v362_v5 = vmax.f32 %v359_v2, 0.0 }
 0x1d9   :  { %363 = vst [vmem:[#allocation2] sm:$0xff] %v362_v5 }
 0x1da   :  { %368 = vsyncadd [#allocation3], 96  ;;  %s594_s1 = smov [#allocation2]  }
 0x1db   :  { %s369_s0 = sshll.u32 %s594_s1, 4  ;;  %s370_s0 = int_to_ptr.vmem [resolvable:$true] %s369_s0 }
 0x1dc   :  { %s566_s2 = scalar_lea.vmem %s370_s0, 32  ;;  %s570_s8 = scalar_lea.vmem %s370_s0, 128 }
 0x1dd   :  { %p567_p0 = scmp.ne.s32.totalorder %s370_s0, %s566_s2  ;;  %p571_p1 = scmp.lt.s32.totalorder %s370_s0, %s370_s0 }
 0x1de   :  { %p572_p2 = scmp.lt.s32.totalorder %s570_s8, %s566_s2 }
 0x1e0   :  { %p573_p3 = por %p572_p2, %p571_p1 }
 0x1e2   :  { %p574_p4 = pnand %p573_p3, %p567_p0 }
 0x1e4   :  { %577 = shalt.err (!%p574_p4)
}
 0x1e5   :  { %s578_s4 = scalar_lea.hbm %s877_s5, 32 }
 0x1e6   :  { %p579_p5 = scmp.ne.s32.totalorder %s877_s5, %s578_s4  ;;  %p582_p6 = scmp.lt.u32.totalorder %s578_s4, %s877_s5 }
 0x1e8   :  { %p584_p7 = pnand %p582_p6, %p579_p5 }
 0x1ea   :  { %587 = shalt.err (!%p584_p7)
}
 0x1eb   :  { %s595_s15 = smov 32   ;;  %s596_s16 = smov 2  }
 0x1ec   :  { %375 = dma.vmem_to_hbm [thread:$0]  %s370_s0, 32, %s877_s5, [#allocation3], %s595_s15, %s595_s15, %s596_s16  }
 0x1ed   :  { %588 = dma.done.wait [#allocation3], 128  }
 0x1ee   :  { %589 = vsyncadd [#allocation3], 4294967168 }
 0x1ef   :  { %379 = vsyncpa [#allocation3], 1 }

</bundles_post_ra>
